<compile_context>
chip_gen: v7x
topology: tpu7x:2x2x1
jax: 0.10.0
libtpu: 0.0.40
codegen_flags: <defaults>
</compile_context>

<pallas_src>
import jax
import jax.numpy as jnp
from jax.experimental import pallas as pl
from jax.experimental.pallas import tpu as pltpu

EMB_DIM = 768
HID_DIM = 512
OUT_DIM = 256


def _mlp_kernel(x_ref, w1_ref, b1_ref, w2_ref, b2_ref, o_ref):
    # x_ref: (tm, EMB_DIM) bf16, w1_ref: (EMB_DIM, HID_DIM) bf16,
    # b1_ref: (1, HID_DIM) f32, w2_ref: (HID_DIM, OUT_DIM) bf16,
    # b2_ref: (1, OUT_DIM) f32, o_ref: (tm, OUT_DIM) f32.
    h = jnp.dot(x_ref[...], w1_ref[...], preferred_element_type=jnp.float32)
    h = jnp.maximum(h + b1_ref[...], 0.0)                      # bias + ReLU in f32
    # Explicit bf16 cast so the second matmul also hits the fast MXU path.
    y = jnp.dot(h.astype(w2_ref.dtype), w2_ref[...],
                preferred_element_type=jnp.float32)
    o_ref[...] = (y + b2_ref[...]).astype(o_ref.dtype)


def embedding_network_forward(x, w1, b1, w2, b2, *, tm=None,
                              compute_dtype=jnp.bfloat16):
    """x: [B, EMB_DIM] -> [B, OUT_DIM] (same float dtype as x).

    tm: batch tile. Default: single block for B <= 1024, else 512.
    """
    B, D = x.shape
    assert D == w1.shape[0]
    H = w1.shape[1]
    O = w2.shape[1]
    out_dtype = x.dtype

    # --- choose batch tile -------------------------------------------------
    if tm is None:
        tm = B if B <= 1024 else 512          # single-block fast path / MXU tile
    tm = max(8, ((tm + 7) // 8) * 8)          # keep a multiple of 8 sublanes

    # --- pad ragged batches instead of forcing tm to divide B --------------
    B_pad = ((B + tm - 1) // tm) * tm
    if B_pad != B:
        x = jnp.pad(x, ((0, B_pad - B), (0, 0)))

    # --- precision: bf16 operands, f32 accumulate / bias ---------------------
    x_c = x.astype(compute_dtype)
    w1_c = w1.astype(compute_dtype)
    w2_c = w2.astype(compute_dtype)
    b1_f = b1.reshape(1, H).astype(jnp.float32)
    b2_f = b2.reshape(1, O).astype(jnp.float32)

    grid = (B_pad // tm,)
    out = pl.pallas_call(
        _mlp_kernel,
        out_shape=jax.ShapeDtypeStruct((B_pad, O), out_dtype),
        grid_spec=pl.GridSpec(
            grid=grid,
            in_specs=[
                pl.BlockSpec((tm, D), lambda i: (i, 0)),   # x tile (pipelined)
                pl.BlockSpec((D, H), lambda i: (0, 0)),    # W1 (grid-invariant)
                pl.BlockSpec((1, H), lambda i: (0, 0)),    # b1
                pl.BlockSpec((H, O), lambda i: (0, 0)),    # W2 (grid-invariant)
                pl.BlockSpec((1, O), lambda i: (0, 0)),    # b2
            ],
            out_specs=pl.BlockSpec((tm, O), lambda i: (i, 0)),
        ),
        compiler_params=pltpu.CompilerParams(
            dimension_semantics=("parallel",)),
    )(x_c, w1_c, b1_f, w2_c, b2_f)

    return out[:B] if B_pad != B else out


def init_params(key, embedding_dim=EMB_DIM, hidden_dim=HID_DIM,
                output_dim=OUT_DIM, dtype=jnp.float32):
    """Deterministic init mimicking torch.nn.Linear (uniform +-1/sqrt(fan_in)).
    Weights are stored as [in, out] so the kernel computes x @ W + b."""
    k1, k2, k3, k4 = jax.random.split(key, 4)
    bound1 = 1.0 / jnp.sqrt(embedding_dim)
    bound2 = 1.0 / jnp.sqrt(hidden_dim)
    w1 = jax.random.uniform(k1, (embedding_dim, hidden_dim), dtype,
                            minval=-bound1, maxval=bound1)
    b1 = jax.random.uniform(k2, (1, hidden_dim), dtype,
                            minval=-bound1, maxval=bound1)
    w2 = jax.random.uniform(k3, (hidden_dim, output_dim), dtype,
                            minval=-bound2, maxval=bound2)
    b2 = jax.random.uniform(k4, (1, output_dim), dtype,
                            minval=-bound2, maxval=bound2)
    return w1, b1, w2, b2


def _reference_f32(x, w1, b1, w2, b2):
    h = jnp.maximum(x @ w1 + b1, 0.0)
    return h @ w2 + b2


if __name__ == "__main__":
    key = jax.random.PRNGKey(0)
    kx, kp = jax.random.split(key)

    B = 16  # small batch of embeddings
    x = jax.random.normal(kx, (B, EMB_DIM), dtype=jnp.float32)
    w1, b1, w2, b2 = init_params(kp)

    # Small-batch fast path: single grid step, whole batch resident.
    out = embedding_network_forward(x, w1, b1, w2, b2)
    out = jax.block_until_ready(out)

    ref = _reference_f32(x, w1, b1, w2, b2)
    assert out.shape == (B, OUT_DIM)
    # bf16-operand / f32-accumulate kernel vs. pure-f32 reference.
    assert jnp.allclose(out, ref, atol=5e-2, rtol=5e-2), "mismatch vs reference"

    # Also exercise the padded multi-step grid path (ragged batch, tm=8).
    out2 = embedding_network_forward(x[:13], w1, b1, w2, b2, tm=8)
    out2 = jax.block_until_ready(out2)
    assert out2.shape == (13, OUT_DIM)
    assert jnp.allclose(out2, ref[:13], atol=5e-2, rtol=5e-2), "mismatch (tiled path)"

    print("KERNEL_OK")
</pallas_src>

<mosaic_0001>
module attributes {stable_mosaic.version = 11 : i64} {
  func.func @_mlp_kernel(%arg0: i32, %arg1: memref<16x768xbf16, #tpu.memory_space<vmem>>, %arg2: memref<768x512xbf16, #tpu.memory_space<vmem>>, %arg3: memref<1x512xf32, #tpu.memory_space<vmem>>, %arg4: memref<512x256xbf16, #tpu.memory_space<vmem>>, %arg5: memref<1x256xf32, #tpu.memory_space<vmem>>, %arg6: memref<16x256xf32, #tpu.memory_space<vmem>>) attributes {dimension_semantics = [#tpu.dimension_semantics<parallel>], iteration_bounds = array<i64: 1>, scalar_prefetch = 0 : i64, scratch_operands = 0 : i64, tpu.core_type = #tpu.core_type<tc>, window_params = [{transform_indices = @transform_0, window_bounds = array<i64: 16, 768>}, {pipeline_mode = #tpu.pipeline_mode<synchronous>, transform_indices = @transform_1, window_bounds = array<i64: 768, 512>}, {pipeline_mode = #tpu.pipeline_mode<synchronous>, transform_indices = @transform_2, window_bounds = array<i64: 1, 512>}, {pipeline_mode = #tpu.pipeline_mode<synchronous>, transform_indices = @transform_3, window_bounds = array<i64: 512, 256>}, {pipeline_mode = #tpu.pipeline_mode<synchronous>, transform_indices = @transform_4, window_bounds = array<i64: 1, 256>}, {transform_indices = @transform_5, window_bounds = array<i64: 16, 256>}]} {
    %c0 = arith.constant 0 : index
    %c0_0 = arith.constant 0 : index
    %0 = vector.load %arg1[%c0, %c0_0] : memref<16x768xbf16, #tpu.memory_space<vmem>>, vector<16x768xbf16>
    %c0_1 = arith.constant 0 : index
    %c0_2 = arith.constant 0 : index
    %1 = vector.load %arg2[%c0_1, %c0_2] : memref<768x512xbf16, #tpu.memory_space<vmem>>, vector<768x512xbf16>
    %cst = arith.constant dense<0.000000e+00> : vector<16x512xf32>
    %2 = tpu.matmul %0, %1, %cst {dimension_numbers = #tpu.dot_dimension_numbers<[1], [0], [0], [1], [0, 0, 1, 1], [], []>} : vector<16x768xbf16>, vector<768x512xbf16>, vector<16x512xf32> -> vector<16x512xf32>
    %c0_3 = arith.constant 0 : index
    %c0_4 = arith.constant 0 : index
    %3 = vector.load %arg3[%c0_3, %c0_4] : memref<1x512xf32, #tpu.memory_space<vmem>>, vector<1x512xf32>
    %4 = vector.broadcast %3 : vector<1x512xf32> to vector<16x512xf32>
    %5 = arith.addf %2, %4 : vector<16x512xf32>
    %cst_5 = arith.constant 0.000000e+00 : f32
    %6 = vector.broadcast %cst_5 : f32 to vector<16x512xf32>
    %7 = arith.maximumf %5, %6 : vector<16x512xf32>
    %8 = arith.truncf %7 : vector<16x512xf32> to vector<16x512xbf16>
    %c0_6 = arith.constant 0 : index
    %c0_7 = arith.constant 0 : index
    %9 = vector.load %arg4[%c0_6, %c0_7] : memref<512x256xbf16, #tpu.memory_space<vmem>>, vector<512x256xbf16>
    %cst_8 = arith.constant dense<0.000000e+00> : vector<16x256xf32>
    %10 = tpu.matmul %8, %9, %cst_8 {dimension_numbers = #tpu.dot_dimension_numbers<[1], [0], [0], [1], [0, 0, 1, 1], [], []>} : vector<16x512xbf16>, vector<512x256xbf16>, vector<16x256xf32> -> vector<16x256xf32>
    %c0_9 = arith.constant 0 : index
    %c0_10 = arith.constant 0 : index
    %11 = vector.load %arg5[%c0_9, %c0_10] : memref<1x256xf32, #tpu.memory_space<vmem>>, vector<1x256xf32>
    %12 = vector.broadcast %11 : vector<1x256xf32> to vector<16x256xf32>
    %13 = arith.addf %10, %12 : vector<16x256xf32>
    %c0_11 = arith.constant 0 : index
    %c0_12 = arith.constant 0 : index
    %14 = vector.load %arg6[%c0_11, %c0_12] : memref<16x256xf32, #tpu.memory_space<vmem>>, vector<16x256xf32>
    tpu.vector_store %arg6[%c0_11, %c0_12], %13 {strides = array<i32>} : memref<16x256xf32, #tpu.memory_space<vmem>>, vector<16x256xf32>,
    return
  }
  func.func @transform_0(%arg0: i32) -> (i32, i32) {
    %c0_i32 = arith.constant 0 : i32
    %c0_i32_0 = arith.constant 0 : i32
    return %arg0, %c0_i32 : i32, i32
  }
  func.func @transform_1(%arg0: i32) -> (i32, i32) {
    %c0_i32 = arith.constant 0 : i32
    %c0_i32_0 = arith.constant 0 : i32
    %c0_i32_1 = arith.constant 0 : i32
    return %c0_i32, %c0_i32_0 : i32, i32
  }
  func.func @transform_2(%arg0: i32) -> (i32, i32) {
    %c0_i32 = arith.constant 0 : i32
    %c0_i32_0 = arith.constant 0 : i32
    %c0_i32_1 = arith.constant 0 : i32
    return %c0_i32, %c0_i32_0 : i32, i32
  }
  func.func @transform_3(%arg0: i32) -> (i32, i32) {
    %c0_i32 = arith.constant 0 : i32
    %c0_i32_0 = arith.constant 0 : i32
    %c0_i32_1 = arith.constant 0 : i32
    return %c0_i32, %c0_i32_0 : i32, i32
  }
  func.func @transform_4(%arg0: i32) -> (i32, i32) {
    %c0_i32 = arith.constant 0 : i32
    %c0_i32_0 = arith.constant 0 : i32
    %c0_i32_1 = arith.constant 0 : i32
    return %c0_i32, %c0_i32_0 : i32, i32
  }
  func.func @transform_5(%arg0: i32) -> (i32, i32) {
    %c0_i32 = arith.constant 0 : i32
    %c0_i32_0 = arith.constant 0 : i32
    return %arg0, %c0_i32 : i32, i32
  }
}

</mosaic_0001>

<bundles_post_ra>
// kernel: tpu_custom_call.1
= control target key start
LH: loop header
LB: loop body
LE: loop exit
PB: predicated region body
PF: predicated region fallthrough
CT: control target
= control target key end

     0   :  { %10 = vsyncpa [#allocation3], 0  ;;  %s2977_s0 = inlined_call_operand.hbm [shape: bf16[16,768], index: 0, kind: input, shape index: {}]   ;;  %s2978_s1 = inlined_call_operand.hbm [shape: bf16[768,512], index: 1, kind: input, shape index: {}]   ;;  %s2979_s2 = inlined_call_operand.vmem [shape: f32[1,512], index: 2, kind: input, shape index: {}]   ;;  %s2980_s3 = inlined_call_operand.hbm [shape: bf16[512,256], index: 3, kind: input, shape index: {}]   ;;  %s2981_s4 = inlined_call_operand.vmem [shape: f32[1,256], index: 4, kind: input, shape index: {}]   ;;  %s2982_s5 = inlined_call_operand.hbm [shape: f32[16,256], index: 5, kind: output, shape index: {}]  }
   0x1   :  { %11 = vsyncpa [#allocation6], 0 }
   0x2   :  { %12 = vsyncpa [#allocation4], 0  ;;  %s2837_s18 = smov [#allocation5]   ;;  %s2743_s22 = scalar_lea.hbm %s2978_s1, 24576 }
   0x3   :  { %s30_s19 = sshll.u32 %s2837_s18, 4  ;;  %p2744_p0 = scmp.ne.s32.totalorder %s2978_s1, %s2743_s22  ;;  %s31_s19 = int_to_ptr.vmem [resolvable:$true] %s30_s19 }
   0x4   :  { %p2747_p1 = scmp.lt.u32.totalorder %s2743_s22, %s2978_s1 }
   0x6   :  { %p2749_p2 = pnand %p2747_p1, %p2744_p0 }
   0x8   :  { %2752 = shalt.err (!%p2749_p2)
}
   0x9   :  { %s2753_s27 = scalar_lea.vmem %s31_s19, 24576  ;;  %p2758_p4 = scmp.lt.s32.totalorder %s31_s19, %s31_s19 }
   0xa   :  { %p2754_p3 = scmp.ne.s32.totalorder %s31_s19, %s2753_s27  ;;  %p2759_p5 = scmp.lt.s32.totalorder %s2753_s27, %s2753_s27 }
   0xc   :  { %p2760_p6 = por %p2759_p5, %p2758_p4 }
   0xe   :  { %p2761_p7 = pnand %p2760_p6, %p2754_p3 }
  0x10   :  { %2764 = shalt.err (!%p2761_p7)
}
  0x11   :  { %s2838_s28 = smov 256   ;;  %s2839_s29 = smov 16  }
  0x12   :  { %36 = dma.hbm_to_vmem [thread:$0]  %s2978_s1, 24576, %s31_s19, [#allocation6], %s2838_s28, %s2838_s28, %s2839_s29  }
  0x13   :  { %s2840_s7 = smov [#allocation2]   ;;  %s2765_s11 = scalar_lea.hbm %s2977_s0, 768 }
  0x14   :  { %s18_s8 = sshll.u32 %s2840_s7, 4  ;;  %p2766_p8 = scmp.ne.s32.totalorder %s2977_s0, %s2765_s11  ;;  %s19_s8 = int_to_ptr.vmem [resolvable:$true] %s18_s8 }
  0x15   :  { %p2769_p9 = scmp.lt.u32.totalorder %s2765_s11, %s2977_s0 }
  0x17   :  { %p2771_p10 = pnand %p2769_p9, %p2766_p8 }
  0x19   :  { %2774 = shalt.err (!%p2771_p10)
}
  0x1a   :  { %s2775_s16 = scalar_lea.vmem %s19_s8, 768  ;;  %p2780_p12 = scmp.lt.s32.totalorder %s19_s8, %s19_s8 }
  0x1b   :  { %p2776_p11 = scmp.ne.s32.totalorder %s19_s8, %s2775_s16  ;;  %p2781_p13 = scmp.lt.s32.totalorder %s2775_s16, %s2775_s16 }
  0x1d   :  { %p2782_p0 = por %p2781_p13, %p2780_p12 }
  0x1f   :  { %p2783_p1 = pnand %p2782_p0, %p2776_p11 }
  0x21   :  { %2786 = shalt.err (!%p2783_p1)
}
  0x22   :  { %s2841_s1 = smov 384   ;;  %s2842_s17 = smov 24  }
  0x23   :  { %24 = dma.hbm_to_vmem [thread:$0]  %s2977_s0, 768, %s19_s8, [#allocation3], %s2841_s1, %s2841_s1, %s2842_s17  }
  0x24   :  { %s2843_s20 = smov [#allocation7]   ;;  %s2787_s24 = scalar_lea.hbm %s2980_s3, 8192 }
  0x25   :  { %s44_s21 = sshll.u32 %s2843_s20, 4  ;;  %p2788_p2 = scmp.ne.s32.totalorder %s2980_s3, %s2787_s24  ;;  %s45_s21 = int_to_ptr.vmem [resolvable:$true] %s44_s21 }
  0x26   :  { %p2791_p3 = scmp.lt.u32.totalorder %s2787_s24, %s2980_s3 }
  0x28   :  { %p2793_p4 = pnand %p2791_p3, %p2788_p2 }
  0x2a   :  { %2796 = shalt.err (!%p2793_p4)
}
  0x2b   :  { %s2797_s6 = scalar_lea.vmem %s45_s21, 8192  ;;  %p2802_p6 = scmp.lt.s32.totalorder %s45_s21, %s45_s21 }
  0x2c   :  { %p2798_p5 = scmp.ne.s32.totalorder %s45_s21, %s2797_s6  ;;  %p2803_p7 = scmp.lt.s32.totalorder %s2797_s6, %s2797_s6 }
  0x2e   :  { %p2804_p8 = por %p2803_p7, %p2802_p6 }
  0x30   :  { %p2805_p9 = pnand %p2804_p8, %p2798_p5 }
  0x32   :  { %2808 = shalt.err (!%p2805_p9)
}
  0x33   :  { %s2844_s0 = smov 128   ;;  %s2845_s7 = smov 8  }
  0x34   :  { %50 = dma.hbm_to_vmem [thread:$0]  %s2980_s3, 8192, %s45_s21, [#allocation6], %s2844_s0, %s2844_s0, %s2845_s7  }
  0x35   :  { %2831 = dma.done.wait [#allocation3], 768  }
  0x36   :  { %2832 = vsyncadd [#allocation3], 4294966528 }
  0x37   :  { %2833 = dma.done.wait [#allocation6], 32768  }
  0x38   :  { %2834 = vsyncadd [#allocation6], 4294934528  ;;  %v2350_v0 = vld [vmem:[#allocation5 + $0x4] ss:$16 sps:$4 sm:$0xff]   ;;  %v2354_v2 = vld [vmem:[#allocation5] ss:$16 sps:$4 sm:$0xff]  }
  0x39   :  { %v2352_v1 = vld [vmem:[#allocation5 + $0x204] ss:$16 sps:$4 sm:$0xff]   ;;  %1272 = vmatprep.subr.bf16.mxu1 %v2350_v0  ;;  %v2355_v3 = vld [vmem:[#allocation5 + $0x200] ss:$16 sps:$4 sm:$0xff]   ;;  %s2846_s12 = smov [#allocation8]  }
  0x3a   :  { %1315 = vmatprep.subr.bf16.mxu0 %v2352_v1  ;;  %v2356_v4 = vld [vmem:[#allocation5 + $0x24] ss:$16 sps:$4 sm:$0xff]   ;;  %1273 = vmatpush1.bf16.msra.mxu1 %v2354_v2  ;;  %v2360_v6 = vld [vmem:[#allocation5 + $0x20] ss:$16 sps:$4 sm:$0xff]   ;;  %s2033_s13 = sshll.u32 %s2846_s12, 4  ;;  %s2034_s13 = int_to_ptr.vmem [resolvable:$true] %s2033_s13 }
  0x3b   :  { %1316 = vmatpush1.bf16.msra.mxu0 %v2355_v3  ;;  %v2358_v5 = vld [vmem:[#allocation5 + $0x224] ss:$16 sps:$4 sm:$0xff]   ;;  %1274 = vmatprep.subr.bf16.mxu1 %v2356_v4  ;;  %v2361_v7 = vld [vmem:[#allocation5 + $0x220] ss:$16 sps:$4 sm:$0xff]   ;;  %v2457_v3 = vld [vmem:[#allocation5 + $0xc] ss:$16 sps:$4 sm:$0xff]   ;;  %p2814_p11 = scmp.lt.s32.totalorder %s2034_s13, %s2034_s13 }
  0x3c   :  { %1317 = vmatprep.subr.bf16.mxu0 %v2358_v5  ;;  %v2362_v8 = vld [vmem:[#allocation5 + $0x44] ss:$16 sps:$4 sm:$0xff]   ;;  %v2366_v10 = vld [vmem:[#allocation5 + $0x40] ss:$16 sps:$4 sm:$0xff]  }
  0x3d   :  { %v2364_v9 = vld [vmem:[#allocation5 + $0x244] ss:$16 sps:$4 sm:$0xff]   ;;  %v2367_v11 = vld [vmem:[#allocation5 + $0x240] ss:$16 sps:$4 sm:$0xff]  }
  0x3e   :  { %1275 = vmatpush1.bf16.msra.mxu1 %v2360_v6  ;;  %v2368_v12 = vld [vmem:[#allocation5 + $0x64] ss:$16 sps:$4 sm:$0xff]   ;;  %v2372_v14 = vld [vmem:[#allocation5 + $0x60] ss:$16 sps:$4 sm:$0xff]  }
  0x3f   :  { %1318 = vmatpush1.bf16.msra.mxu0 %v2361_v7  ;;  %1276 = vmatprep.subr.bf16.mxu1 %v2362_v8  ;;  %v2370_v13 = vld [vmem:[#allocation5 + $0x264] ss:$16 sps:$4 sm:$0xff]   ;;  %v2373_v15 = vld [vmem:[#allocation5 + $0x260] ss:$16 sps:$4 sm:$0xff]   ;;  %v2455_v7 = vld [vmem:[#allocation5 + $0x8] ss:$16 sps:$4 sm:$0xff]  }
  0x40   :  { %1319 = vmatprep.subr.bf16.mxu0 %v2364_v9  ;;  %v2374_v16 = vld [vmem:[#allocation5 + $0x84] ss:$16 sps:$4 sm:$0xff]   ;;  %v2378_v18 = vld [vmem:[#allocation5 + $0x80] ss:$16 sps:$4 sm:$0xff]   ;;  %v2463_v9 = vld [vmem:[#allocation5 + $0x2c] ss:$16 sps:$4 sm:$0xff]  }
  0x41   :  { %v2376_v17 = vld [vmem:[#allocation5 + $0x284] ss:$16 sps:$4 sm:$0xff]   ;;  %v2379_v19 = vld [vmem:[#allocation5 + $0x280] ss:$16 sps:$4 sm:$0xff]  }
  0x42   :  { %1277 = vmatpush1.bf16.msra.mxu1 %v2366_v10  ;;  %v2380_v20 = vld [vmem:[#allocation5 + $0xa4] ss:$16 sps:$4 sm:$0xff]   ;;  %v2384_v22 = vld [vmem:[#allocation5 + $0xa0] ss:$16 sps:$4 sm:$0xff]  }
  0x43   :  { %1320 = vmatpush1.bf16.msra.mxu0 %v2367_v11  ;;  %1278 = vmatprep.subr.bf16.mxu1 %v2368_v12  ;;  %v2382_v21 = vld [vmem:[#allocation5 + $0x2a4] ss:$16 sps:$4 sm:$0xff]   ;;  %v2385_v23 = vld [vmem:[#allocation5 + $0x2a0] ss:$16 sps:$4 sm:$0xff]   ;;  %v2461_v11 = vld [vmem:[#allocation5 + $0x28] ss:$16 sps:$4 sm:$0xff]  }
  0x44   :  { %1321 = vmatprep.subr.bf16.mxu0 %v2370_v13  ;;  %v2386_v24 = vld [vmem:[#allocation5 + $0xc4] ss:$16 sps:$4 sm:$0xff]   ;;  %v2390_v26 = vld [vmem:[#allocation5 + $0xc0] ss:$16 sps:$4 sm:$0xff]   ;;  %v2469_v13 = vld [vmem:[#allocation5 + $0x4c] ss:$16 sps:$4 sm:$0xff]  }
  0x45   :  { %v2388_v25 = vld [vmem:[#allocation5 + $0x2c4] ss:$16 sps:$4 sm:$0xff]   ;;  %v2391_v27 = vld [vmem:[#allocation5 + $0x2c0] ss:$16 sps:$4 sm:$0xff]  }
  0x46   :  { %1279 = vmatpush1.bf16.msra.mxu1 %v2372_v14  ;;  %v2392_v28 = vld [vmem:[#allocation5 + $0xe4] ss:$16 sps:$4 sm:$0xff]   ;;  %v2396_v30 = vld [vmem:[#allocation5 + $0xe0] ss:$16 sps:$4 sm:$0xff]  }
  0x47   :  { %1322 = vmatpush1.bf16.msra.mxu0 %v2373_v15  ;;  %1280 = vmatprep.subr.bf16.mxu1 %v2374_v16  ;;  %v2394_v29 = vld [vmem:[#allocation5 + $0x2e4] ss:$16 sps:$4 sm:$0xff]   ;;  %v2397_v31 = vld [vmem:[#allocation5 + $0x2e0] ss:$16 sps:$4 sm:$0xff]   ;;  %v2467_v15 = vld [vmem:[#allocation5 + $0x48] ss:$16 sps:$4 sm:$0xff]  }
  0x48   :  { %1323 = vmatprep.subr.bf16.mxu0 %v2376_v17  ;;  %v2398_v32 = vld [vmem:[#allocation5 + $0x104] ss:$16 sps:$4 sm:$0xff]   ;;  %v2402_v34 = vld [vmem:[#allocation5 + $0x100] ss:$16 sps:$4 sm:$0xff]   ;;  %v2475_v17 = vld [vmem:[#allocation5 + $0x6c] ss:$16 sps:$4 sm:$0xff]  }
  0x49   :  { %v2400_v33 = vld [vmem:[#allocation5 + $0x304] ss:$16 sps:$4 sm:$0xff]   ;;  %v2403_v35 = vld [vmem:[#allocation5 + $0x300] ss:$16 sps:$4 sm:$0xff]  }
  0x4a   :  { %1281 = vmatpush1.bf16.msra.mxu1 %v2378_v18  ;;  %v2404_v36 = vld [vmem:[#allocation5 + $0x124] ss:$16 sps:$4 sm:$0xff]   ;;  %v2408_v38 = vld [vmem:[#allocation5 + $0x120] ss:$16 sps:$4 sm:$0xff]  }
  0x4b   :  { %1324 = vmatpush1.bf16.msra.mxu0 %v2379_v19  ;;  %1282 = vmatprep.subr.bf16.mxu1 %v2380_v20  ;;  %v2406_v37 = vld [vmem:[#allocation5 + $0x324] ss:$16 sps:$4 sm:$0xff]   ;;  %v2409_v39 = vld [vmem:[#allocation5 + $0x320] ss:$16 sps:$4 sm:$0xff]   ;;  %v2473_v19 = vld [vmem:[#allocation5 + $0x68] ss:$16 sps:$4 sm:$0xff]  }
  0x4c   :  { %1325 = vmatprep.subr.bf16.mxu0 %v2382_v21  ;;  %v2410_v40 = vld [vmem:[#allocation5 + $0x144] ss:$16 sps:$4 sm:$0xff]   ;;  %v2414_v42 = vld [vmem:[#allocation5 + $0x140] ss:$16 sps:$4 sm:$0xff]   ;;  %v2481_v21 = vld [vmem:[#allocation5 + $0x8c] ss:$16 sps:$4 sm:$0xff]  }
  0x4d   :  { %v2412_v41 = vld [vmem:[#allocation5 + $0x344] ss:$16 sps:$4 sm:$0xff]   ;;  %v2415_v43 = vld [vmem:[#allocation5 + $0x340] ss:$16 sps:$4 sm:$0xff]  }
  0x4e   :  { %1283 = vmatpush1.bf16.msra.mxu1 %v2384_v22  ;;  %v2416_v44 = vld [vmem:[#allocation5 + $0x164] ss:$16 sps:$4 sm:$0xff]   ;;  %v2420_v46 = vld [vmem:[#allocation5 + $0x160] ss:$16 sps:$4 sm:$0xff]  }
  0x4f   :  { %1326 = vmatpush1.bf16.msra.mxu0 %v2385_v23  ;;  %1284 = vmatprep.subr.bf16.mxu1 %v2386_v24  ;;  %v2418_v45 = vld [vmem:[#allocation5 + $0x364] ss:$16 sps:$4 sm:$0xff]   ;;  %v2421_v47 = vld [vmem:[#allocation5 + $0x360] ss:$16 sps:$4 sm:$0xff]   ;;  %v2479_v23 = vld [vmem:[#allocation5 + $0x88] ss:$16 sps:$4 sm:$0xff]  }
  0x50   :  { %1327 = vmatprep.subr.bf16.mxu0 %v2388_v25  ;;  %v2422_v48 = vld [vmem:[#allocation5 + $0x184] ss:$16 sps:$4 sm:$0xff]   ;;  %v2426_v52 = vld [vmem:[#allocation5 + $0x180] ss:$16 sps:$4 sm:$0xff]   ;;  %v2487_v25 = vld [vmem:[#allocation5 + $0xac] ss:$16 sps:$4 sm:$0xff]  }
  0x51   :  { %v2448_v49 = vld [vmem:[#allocation2 + $0x4] ss:$24 sps:$4 sm:$0xff]   ;;  %v2427_v53 = vld [vmem:[#allocation5 + $0x380] ss:$16 sps:$4 sm:$0xff]  }
  0x52   :  { %1285 = vmatpush1.bf16.msra.mxu1 %v2390_v26  ;;  %v2424_v50 = vld [vmem:[#allocation5 + $0x384] ss:$16 sps:$4 sm:$0xff]   ;;  %1304 = vmatprep.mubr.bf16.mxu1 %v2448_v49  ;;  %v2432_v56 = vld [vmem:[#allocation5 + $0x1a0] ss:$16 sps:$4 sm:$0xff]  }
  0x53   :  { %1328 = vmatpush1.bf16.msra.mxu0 %v2391_v27  ;;  %1286 = vmatprep.subr.bf16.mxu1 %v2392_v28  ;;  %v2916_v51 = vld [vmem:[#allocation2 + $0xc] ss:$24 sps:$4 sm:$0xff]   ;;  %v2433_v57 = vld [vmem:[#allocation5 + $0x3a0] ss:$16 sps:$4 sm:$0xff]   ;;  %v2485_v27 = vld [vmem:[#allocation5 + $0xa8] ss:$16 sps:$4 sm:$0xff]  }
  0x54   :  { %1329 = vmatprep.subr.bf16.mxu0 %v2394_v29  ;;  %1347 = vmatprep.mubr.bf16.mxu0 %v2916_v51  ;;  %v2428_v54 = vld [vmem:[#allocation5 + $0x1a4] ss:$16 sps:$4 sm:$0xff]   ;;  %v2438_v60 = vld [vmem:[#allocation5 + $0x1c0] ss:$16 sps:$4 sm:$0xff]   ;;  %v2493_v29 = vld [vmem:[#allocation5 + $0xcc] ss:$16 sps:$4 sm:$0xff]  }
  0x55   :  { %v2430_v55 = vld [vmem:[#allocation5 + $0x3a4] ss:$16 sps:$4 sm:$0xff]   ;;  %v2439_v61 = vld [vmem:[#allocation5 + $0x3c0] ss:$16 sps:$4 sm:$0xff]  }
  0x56   :  { %1287 = vmatpush1.bf16.msra.mxu1 %v2396_v30  ;;  %v2434_v58 = vld [vmem:[#allocation5 + $0x1c4] ss:$16 sps:$4 sm:$0xff]   ;;  %v2444_v0 = vld [vmem:[#allocation5 + $0x1e0] ss:$16 sps:$4 sm:$0xff]  }
  0x57   :  { %1330 = vmatpush1.bf16.msra.mxu0 %v2397_v31  ;;  %1288 = vmatprep.subr.bf16.mxu1 %v2398_v32  ;;  %v2436_v59 = vld [vmem:[#allocation5 + $0x3c4] ss:$16 sps:$4 sm:$0xff]   ;;  %v2445_v1 = vld [vmem:[#allocation5 + $0x3e0] ss:$16 sps:$4 sm:$0xff]   ;;  %v2491_v31 = vld [vmem:[#allocation5 + $0xc8] ss:$16 sps:$4 sm:$0xff]  }
  0x58   :  { %1331 = vmatprep.subr.bf16.mxu0 %v2400_v33  ;;  %v2440_v62 = vld [vmem:[#allocation5 + $0x1e4] ss:$16 sps:$4 sm:$0xff]   ;;  %v2919_v4 = vld [vmem:[#allocation2] ss:$24 sps:$4 sm:$0xff]   ;;  %v2499_v33 = vld [vmem:[#allocation5 + $0xec] ss:$16 sps:$4 sm:$0xff]  }
  0x59   :  { %v2442_v63 = vld [vmem:[#allocation5 + $0x3e4] ss:$16 sps:$4 sm:$0xff]   ;;  %v2921_v5 = vld [vmem:[#allocation2 + $0x8] ss:$24 sps:$4 sm:$0xff]  }
  0x5a   :  { %1289 = vmatpush1.bf16.msra.mxu1 %v2402_v34  ;;  %v2454_v2 = vld [vmem:[#allocation5 + $0x404] ss:$16 sps:$4 sm:$0xff]   ;;  %v2452_v6 = vld [vmem:[#allocation5 + $0x400] ss:$16 sps:$4 sm:$0xff]  }
  0x5b   :  { %1332 = vmatpush1.bf16.msra.mxu0 %v2403_v35  ;;  %1290 = vmatprep.subr.bf16.mxu1 %v2404_v36  ;;  %v2460_v8 = vld [vmem:[#allocation5 + $0x424] ss:$16 sps:$4 sm:$0xff]   ;;  %v2458_v10 = vld [vmem:[#allocation5 + $0x420] ss:$16 sps:$4 sm:$0xff]   ;;  %v2497_v36 = vld [vmem:[#allocation5 + $0xe8] ss:$16 sps:$4 sm:$0xff]  }
  0x5c   :  { %1333 = vmatprep.subr.bf16.mxu0 %v2406_v37  ;;  %v2466_v12 = vld [vmem:[#allocation5 + $0x444] ss:$16 sps:$4 sm:$0xff]   ;;  %v2464_v14 = vld [vmem:[#allocation5 + $0x440] ss:$16 sps:$4 sm:$0xff]  }
  0x5d   :  { %v2472_v16 = vld [vmem:[#allocation5 + $0x464] ss:$16 sps:$4 sm:$0xff]   ;;  %v2470_v18 = vld [vmem:[#allocation5 + $0x460] ss:$16 sps:$4 sm:$0xff]  }
  0x5e   :  { %1291 = vmatpush1.bf16.msra.mxu1 %v2408_v38  ;;  %v2478_v20 = vld [vmem:[#allocation5 + $0x484] ss:$16 sps:$4 sm:$0xff]   ;;  %v2476_v22 = vld [vmem:[#allocation5 + $0x480] ss:$16 sps:$4 sm:$0xff]   ;;  %v2505_v38 = vld [vmem:[#allocation5 + $0x10c] ss:$16 sps:$4 sm:$0xff]  }
  0x5f   :  { %1334 = vmatpush1.bf16.msra.mxu0 %v2409_v39  ;;  %1292 = vmatprep.subr.bf16.mxu1 %v2410_v40  ;;  %v2484_v24 = vld [vmem:[#allocation5 + $0x4a4] ss:$16 sps:$4 sm:$0xff]   ;;  %v2482_v26 = vld [vmem:[#allocation5 + $0x4a0] ss:$16 sps:$4 sm:$0xff]   ;;  %v2503_v40 = vld [vmem:[#allocation5 + $0x108] ss:$16 sps:$4 sm:$0xff]  }
  0x60   :  { %1335 = vmatprep.subr.bf16.mxu0 %v2412_v41  ;;  %v2490_v28 = vld [vmem:[#allocation5 + $0x4c4] ss:$16 sps:$4 sm:$0xff]   ;;  %v2488_v30 = vld [vmem:[#allocation5 + $0x4c0] ss:$16 sps:$4 sm:$0xff]  }
  0x61   :  { %v2496_v32 = vld [vmem:[#allocation5 + $0x4e4] ss:$16 sps:$4 sm:$0xff]   ;;  %v2494_v35 = vld [vmem:[#allocation5 + $0x4e0] ss:$16 sps:$4 sm:$0xff]  }
  0x62   :  { %1293 = vmatpush1.bf16.msra.mxu1 %v2414_v42  ;;  %v2925_v34 = vld [vmem:[#allocation2 + $0x14] ss:$24 sps:$4 sm:$0xff]   ;;  %v2500_v39 = vld [vmem:[#allocation5 + $0x500] ss:$16 sps:$4 sm:$0xff]  }
  0x63   :  { %1336 = vmatpush1.bf16.msra.mxu0 %v2415_v43  ;;  %1294 = vmatprep.subr.bf16.mxu1 %v2416_v44  ;;  %v2502_v37 = vld [vmem:[#allocation5 + $0x504] ss:$16 sps:$4 sm:$0xff]   ;;  %v2511_v42 = vld [vmem:[#allocation5 + $0x12c] ss:$16 sps:$4 sm:$0xff]   ;;  %v2506_v43 = vld [vmem:[#allocation5 + $0x520] ss:$16 sps:$4 sm:$0xff]  }
  0x64   :  { %1337 = vmatprep.subr.bf16.mxu0 %v2418_v45  ;;  %v2508_v41 = vld [vmem:[#allocation5 + $0x524] ss:$16 sps:$4 sm:$0xff]   ;;  %v2509_v44 = vld [vmem:[#allocation5 + $0x128] ss:$16 sps:$4 sm:$0xff]  }
  0x65   :  { %v2514_v45 = vld [vmem:[#allocation5 + $0x544] ss:$16 sps:$4 sm:$0xff]  }
  0x66   :  { %1295 = vmatpush1.bf16.msra.mxu1 %v2420_v46  ;;  %v2517_v46 = vld [vmem:[#allocation5 + $0x14c] ss:$16 sps:$4 sm:$0xff]  }
  0x67   :  { %1338 = vmatpush1.bf16.msra.mxu0 %v2421_v47  ;;  %1296 = vmatprep.subr.bf16.mxu1 %v2422_v48  ;;  %v2512_v47 = vld [vmem:[#allocation5 + $0x540] ss:$16 sps:$4 sm:$0xff]   ;;  %v2515_v48 = vld [vmem:[#allocation5 + $0x148] ss:$16 sps:$4 sm:$0xff]  }
  0x68   :  { %1339 = vmatprep.subr.bf16.mxu0 %v2424_v50  ;;  %v2523_v50 = vld [vmem:[#allocation5 + $0x16c] ss:$16 sps:$4 sm:$0xff]  }
  0x6a   :  { %1297 = vmatpush1.bf16.msra.mxu1 %v2426_v52  ;;  %v2518_v52 = vld [vmem:[#allocation5 + $0x560] ss:$16 sps:$4 sm:$0xff]  }
  0x6b   :  { %1340 = vmatpush1.bf16.msra.mxu0 %v2427_v53  ;;  %1298 = vmatprep.subr.bf16.mxu1 %v2428_v54  ;;  %v2521_v53 = vld [vmem:[#allocation5 + $0x168] ss:$16 sps:$4 sm:$0xff]   ;;  %v2526_v54 = vld [vmem:[#allocation5 + $0x584] ss:$16 sps:$4 sm:$0xff]  }
  0x6c   :  { %1341 = vmatprep.subr.bf16.mxu0 %v2430_v55  ;;  %v2529_v55 = vld [vmem:[#allocation5 + $0x18c] ss:$16 sps:$4 sm:$0xff]  }
  0x6e   :  { %1299 = vmatpush1.bf16.msra.mxu1 %v2432_v56  ;;  %v2524_v56 = vld [vmem:[#allocation5 + $0x580] ss:$16 sps:$4 sm:$0xff]  }
  0x6f   :  { %1342 = vmatpush1.bf16.msra.mxu0 %v2433_v57  ;;  %1300 = vmatprep.subr.bf16.mxu1 %v2434_v58  ;;  %v2527_v57 = vld [vmem:[#allocation5 + $0x188] ss:$16 sps:$4 sm:$0xff]   ;;  %v2532_v58 = vld [vmem:[#allocation5 + $0x5a4] ss:$16 sps:$4 sm:$0xff]  }
  0x70   :  { %1343 = vmatprep.subr.bf16.mxu0 %v2436_v59  ;;  %v2535_v59 = vld [vmem:[#allocation5 + $0x1ac] ss:$16 sps:$4 sm:$0xff]  }
  0x72   :  { %1301 = vmatpush1.bf16.msra.mxu1 %v2438_v60  ;;  %v2530_v60 = vld [vmem:[#allocation5 + $0x5a0] ss:$16 sps:$4 sm:$0xff]  }
  0x73   :  { %1344 = vmatpush1.bf16.msra.mxu0 %v2439_v61  ;;  %1302 = vmatprep.subr.bf16.mxu1 %v2440_v62  ;;  %v2533_v61 = vld [vmem:[#allocation5 + $0x1a8] ss:$16 sps:$4 sm:$0xff]   ;;  %v2538_v62 = vld [vmem:[#allocation5 + $0x5c4] ss:$16 sps:$4 sm:$0xff]  }
  0x74   :  { %1345 = vmatprep.subr.bf16.mxu0 %v2442_v63  ;;  %v2541_v63 = vld [vmem:[#allocation5 + $0x1cc] ss:$16 sps:$4 sm:$0xff]  }
  0x76   :  { %1303 = vmatpush1.bf16.msra.mxu1 %v2444_v0  ;;  %v2536_v0 = vld [vmem:[#allocation5 + $0x5c0] ss:$16 sps:$4 sm:$0xff]  }
  0x77   :  { %1346 = vmatpush1.bf16.msra.mxu0 %v2445_v1  ;;  %1401 = vmatprep.subr.bf16.mxu1 %v2457_v3  ;;  %v2539_v1 = vld [vmem:[#allocation5 + $0x1c8] ss:$16 sps:$4 sm:$0xff]   ;;  %v2547_v3 = vld [vmem:[#allocation5 + $0x1ec] ss:$16 sps:$4 sm:$0xff]  }
  0x78   :  { %1358 = vmatprep.subr.bf16.mxu0 %v2454_v2  ;;  %v2544_v2 = vld [vmem:[#allocation5 + $0x5e4] ss:$16 sps:$4 sm:$0xff]  }
  0x79   :  { %1305 = vmatmul.mubr.bf16.vlgmr.msra.gmra.mrb[0].mxu1 %v2919_v4 }
  0x7a   :  { %1348 = vmatmul.mubr.bf16.vlgmr.msra.gmra.mrb[0].mxu0 %v2921_v5  ;;  %1402 = vmatpush1.bf16.msra.mxu1 %v2455_v7  ;;  %v2545_v7 = vld [vmem:[#allocation5 + $0x1e8] ss:$16 sps:$4 sm:$0xff]  }
  0x7b   :  { %1359 = vmatpush1.bf16.msra.mxu0 %v2452_v6  ;;  %1403 = vmatprep.subr.bf16.mxu1 %v2463_v9  ;;  %v2542_v6 = vld [vmem:[#allocation5 + $0x5e0] ss:$16 sps:$4 sm:$0xff]  }
  0x7c   :  { %1360 = vmatprep.subr.bf16.mxu0 %v2460_v8  ;;  %1433 = vmatprep.mubr.bf16.mxu1 %v2448_v49  ;;  %v2520_v49 = vld [vmem:[#allocation5 + $0x564] ss:$16 sps:$4 sm:$0xff]   ;;  %v2553_v8 = vld [vmem:[#allocation5 + $0x20c] ss:$16 sps:$4 sm:$0xff]   ;;  %v2928_v9 = vld [vmem:[#allocation2 + $0x10] ss:$24 sps:$4 sm:$0xff]  }
  0x7d   :  { %1390 = vmatprep.mubr.bf16.mxu0 %v2925_v34 }
  0x7e   :  { %1404 = vmatpush1.bf16.msra.mxu1 %v2461_v11  ;;  %v2556_v11 = vld [vmem:[#allocation5 + $0x22c] ss:$16 sps:$4 sm:$0xff]  }
  0x7f   :  { %1361 = vmatpush1.bf16.msra.mxu0 %v2458_v10  ;;  %1405 = vmatprep.subr.bf16.mxu1 %v2469_v13  ;;  %v2551_v10 = vld [vmem:[#allocation5 + $0x208] ss:$16 sps:$4 sm:$0xff]   ;;  %v2559_v13 = vld [vmem:[#allocation5 + $0x24c] ss:$16 sps:$4 sm:$0xff]  }
  0x80   :  { %1362 = vmatprep.subr.bf16.mxu0 %v2466_v12  ;;  %v2554_v12 = vld [vmem:[#allocation5 + $0x228] ss:$16 sps:$4 sm:$0xff]  }
  0x82   :  { %1406 = vmatpush1.bf16.msra.mxu1 %v2467_v15  ;;  %v2562_v15 = vld [vmem:[#allocation5 + $0x26c] ss:$16 sps:$4 sm:$0xff]  }
  0x83   :  { %1363 = vmatpush1.bf16.msra.mxu0 %v2464_v14  ;;  %1407 = vmatprep.subr.bf16.mxu1 %v2475_v17  ;;  %v2557_v14 = vld [vmem:[#allocation5 + $0x248] ss:$16 sps:$4 sm:$0xff]   ;;  %v2565_v17 = vld [vmem:[#allocation5 + $0x28c] ss:$16 sps:$4 sm:$0xff]  }
  0x84   :  { %1364 = vmatprep.subr.bf16.mxu0 %v2472_v16  ;;  %v2560_v16 = vld [vmem:[#allocation5 + $0x268] ss:$16 sps:$4 sm:$0xff]  }
  0x86   :  { %1408 = vmatpush1.bf16.msra.mxu1 %v2473_v19  ;;  %v2568_v19 = vld [vmem:[#allocation5 + $0x2ac] ss:$16 sps:$4 sm:$0xff]  }
  0x87   :  { %1365 = vmatpush1.bf16.msra.mxu0 %v2470_v18  ;;  %1409 = vmatprep.subr.bf16.mxu1 %v2481_v21  ;;  %v2563_v18 = vld [vmem:[#allocation5 + $0x288] ss:$16 sps:$4 sm:$0xff]  }
  0x88   :  { %1366 = vmatprep.subr.bf16.mxu0 %v2478_v20  ;;  %v2566_v20 = vld [vmem:[#allocation5 + $0x2a8] ss:$16 sps:$4 sm:$0xff]  }
  0x89   :  { %v2569_v21 = vld [vmem:[#allocation5 + $0x2c8] ss:$16 sps:$4 sm:$0xff]  }
  0x8a   :  { %1410 = vmatpush1.bf16.msra.mxu1 %v2479_v23  ;;  %v2649_v23 = vld [vmem:[#allocation7 + $0x4] ss:$8 sps:$4 sm:$0xff]  }
  0x8b   :  { %1367 = vmatpush1.bf16.msra.mxu0 %v2476_v22  ;;  %1411 = vmatprep.subr.bf16.mxu1 %v2487_v25  ;;  %v2647_v22 = vld [vmem:[#allocation7] ss:$8 sps:$4 sm:$0xff]  }
  0x8c   :  { %1368 = vmatprep.subr.bf16.mxu0 %v2484_v24  ;;  %v2652_v24 = vld [vmem:[#allocation7 + $0x14] ss:$8 sps:$4 sm:$0xff]   ;;  %v2572_v25 = vld [vmem:[#allocation5 + $0x2e8] ss:$16 sps:$4 sm:$0xff]  }
  0x8e   :  { %1412 = vmatpush1.bf16.msra.mxu1 %v2485_v27  ;;  %v2650_v27 = vld [vmem:[#allocation7 + $0x10] ss:$8 sps:$4 sm:$0xff]  }
  0x8f   :  { %1369 = vmatpush1.bf16.msra.mxu0 %v2482_v26  ;;  %1413 = vmatprep.subr.bf16.mxu1 %v2493_v29  ;;  %v2577_v26 = vld [vmem:[#allocation5 + $0x30c] ss:$16 sps:$4 sm:$0xff]   ;;  %v2575_v29 = vld [vmem:[#allocation5 + $0x308] ss:$16 sps:$4 sm:$0xff]  }
  0x90   :  { %1370 = vmatprep.subr.bf16.mxu0 %v2490_v28  ;;  %v2655_v28 = vld [vmem:[#allocation7 + $0x24] ss:$8 sps:$4 sm:$0xff]  }
  0x92   :  { %1414 = vmatpush1.bf16.msra.mxu1 %v2491_v31  ;;  %v2653_v31 = vld [vmem:[#allocation7 + $0x20] ss:$8 sps:$4 sm:$0xff]  }
  0x93   :  { %1371 = vmatpush1.bf16.msra.mxu0 %v2488_v30  ;;  %1415 = vmatprep.subr.bf16.mxu1 %v2499_v33  ;;  %v2580_v30 = vld [vmem:[#allocation5 + $0x32c] ss:$16 sps:$4 sm:$0xff]   ;;  %v2578_v33 = vld [vmem:[#allocation5 + $0x328] ss:$16 sps:$4 sm:$0xff]  }
  0x94   :  { %1372 = vmatprep.subr.bf16.mxu0 %v2496_v32  ;;  %v2658_v32 = vld [vmem:[#allocation7 + $0x34] ss:$8 sps:$4 sm:$0xff]  }
  0x96   :  { %1416 = vmatpush1.bf16.msra.mxu1 %v2497_v36  ;;  %v2656_v36 = vld [vmem:[#allocation7 + $0x30] ss:$8 sps:$4 sm:$0xff]  }
  0x97   :  { %1373 = vmatpush1.bf16.msra.mxu0 %v2494_v35  ;;  %1417 = vmatprep.subr.bf16.mxu1 %v2505_v38  ;;  %v2583_v35 = vld [vmem:[#allocation5 + $0x34c] ss:$16 sps:$4 sm:$0xff]   ;;  %v2581_v38 = vld [vmem:[#allocation5 + $0x348] ss:$16 sps:$4 sm:$0xff]  }
  0x98   :  { %1374 = vmatprep.subr.bf16.mxu0 %v2502_v37  ;;  %v2661_v37 = vld [vmem:[#allocation7 + $0x44] ss:$8 sps:$4 sm:$0xff]  }
  0x9a   :  { %1418 = vmatpush1.bf16.msra.mxu1 %v2503_v40  ;;  %v2659_v40 = vld [vmem:[#allocation7 + $0x40] ss:$8 sps:$4 sm:$0xff]  }
  0x9b   :  { %1375 = vmatpush1.bf16.msra.mxu0 %v2500_v39  ;;  %1419 = vmatprep.subr.bf16.mxu1 %v2511_v42  ;;  %v2586_v39 = vld [vmem:[#allocation5 + $0x36c] ss:$16 sps:$4 sm:$0xff]   ;;  %v2584_v42 = vld [vmem:[#allocation5 + $0x368] ss:$16 sps:$4 sm:$0xff]  }
  0x9c   :  { %1376 = vmatprep.subr.bf16.mxu0 %v2508_v41  ;;  %v2664_v41 = vld [vmem:[#allocation7 + $0x54] ss:$8 sps:$4 sm:$0xff]  }
  0x9e   :  { %1420 = vmatpush1.bf16.msra.mxu1 %v2509_v44  ;;  %v2662_v44 = vld [vmem:[#allocation7 + $0x50] ss:$8 sps:$4 sm:$0xff]  }
  0x9f   :  { %1377 = vmatpush1.bf16.msra.mxu0 %v2506_v43  ;;  %1421 = vmatprep.subr.bf16.mxu1 %v2517_v46  ;;  %v2589_v43 = vld [vmem:[#allocation5 + $0x38c] ss:$16 sps:$4 sm:$0xff]   ;;  %v2587_v46 = vld [vmem:[#allocation5 + $0x388] ss:$16 sps:$4 sm:$0xff]  }
  0xa0   :  { %1378 = vmatprep.subr.bf16.mxu0 %v2514_v45  ;;  %v2667_v45 = vld [vmem:[#allocation7 + $0x64] ss:$8 sps:$4 sm:$0xff]  }
  0xa2   :  { %1422 = vmatpush1.bf16.msra.mxu1 %v2515_v48  ;;  %v2665_v48 = vld [vmem:[#allocation7 + $0x60] ss:$8 sps:$4 sm:$0xff]  }
  0xa3   :  { %1379 = vmatpush1.bf16.msra.mxu0 %v2512_v47  ;;  %1423 = vmatprep.subr.bf16.mxu1 %v2523_v50  ;;  %v2592_v47 = vld [vmem:[#allocation5 + $0x3ac] ss:$16 sps:$4 sm:$0xff]   ;;  %v2590_v50 = vld [vmem:[#allocation5 + $0x3a8] ss:$16 sps:$4 sm:$0xff]  }
  0xa4   :  { %1380 = vmatprep.subr.bf16.mxu0 %v2520_v49  ;;  %v2670_v49 = vld [vmem:[#allocation7 + $0x74] ss:$8 sps:$4 sm:$0xff]  }
  0xa6   :  { %1424 = vmatpush1.bf16.msra.mxu1 %v2521_v53  ;;  %v2668_v53 = vld [vmem:[#allocation7 + $0x70] ss:$8 sps:$4 sm:$0xff]  }
  0xa7   :  { %1381 = vmatpush1.bf16.msra.mxu0 %v2518_v52  ;;  %1425 = vmatprep.subr.bf16.mxu1 %v2529_v55  ;;  %v2595_v52 = vld [vmem:[#allocation5 + $0x3cc] ss:$16 sps:$4 sm:$0xff]   ;;  %v2593_v55 = vld [vmem:[#allocation5 + $0x3c8] ss:$16 sps:$4 sm:$0xff]  }
  0xa8   :  { %1382 = vmatprep.subr.bf16.mxu0 %v2526_v54  ;;  %v2673_v54 = vld [vmem:[#allocation7 + $0x84] ss:$8 sps:$4 sm:$0xff]  }
  0xaa   :  { %1426 = vmatpush1.bf16.msra.mxu1 %v2527_v57  ;;  %v2671_v57 = vld [vmem:[#allocation7 + $0x80] ss:$8 sps:$4 sm:$0xff]  }
  0xab   :  { %1383 = vmatpush1.bf16.msra.mxu0 %v2524_v56  ;;  %1427 = vmatprep.subr.bf16.mxu1 %v2535_v59  ;;  %v2598_v56 = vld [vmem:[#allocation5 + $0x3ec] ss:$16 sps:$4 sm:$0xff]   ;;  %v2596_v59 = vld [vmem:[#allocation5 + $0x3e8] ss:$16 sps:$4 sm:$0xff]  }
  0xac   :  { %1384 = vmatprep.subr.bf16.mxu0 %v2532_v58  ;;  %v2676_v58 = vld [vmem:[#allocation7 + $0x94] ss:$8 sps:$4 sm:$0xff]  }
  0xae   :  { %1428 = vmatpush1.bf16.msra.mxu1 %v2533_v61  ;;  %v2674_v61 = vld [vmem:[#allocation7 + $0x90] ss:$8 sps:$4 sm:$0xff]  }
  0xaf   :  { %1385 = vmatpush1.bf16.msra.mxu0 %v2530_v60  ;;  %1429 = vmatprep.subr.bf16.mxu1 %v2541_v63  ;;  %v2601_v60 = vld [vmem:[#allocation5 + $0x40c] ss:$16 sps:$4 sm:$0xff]   ;;  %v2599_v63 = vld [vmem:[#allocation5 + $0x408] ss:$16 sps:$4 sm:$0xff]  }
  0xb0   :  { %1386 = vmatprep.subr.bf16.mxu0 %v2538_v62  ;;  %v2679_v62 = vld [vmem:[#allocation7 + $0xa4] ss:$8 sps:$4 sm:$0xff]  }
  0xb2   :  { %1430 = vmatpush1.bf16.msra.mxu1 %v2539_v1  ;;  %v2677_v1 = vld [vmem:[#allocation7 + $0xa0] ss:$8 sps:$4 sm:$0xff]  }
  0xb3   :  { %1387 = vmatpush1.bf16.msra.mxu0 %v2536_v0  ;;  %1431 = vmatprep.subr.bf16.mxu1 %v2547_v3  ;;  %v2604_v0 = vld [vmem:[#allocation5 + $0x42c] ss:$16 sps:$4 sm:$0xff]   ;;  %v2602_v3 = vld [vmem:[#allocation5 + $0x428] ss:$16 sps:$4 sm:$0xff]  }
  0xb4   :  { %1388 = vmatprep.subr.bf16.mxu0 %v2544_v2  ;;  %v2682_v2 = vld [vmem:[#allocation7 + $0xb4] ss:$8 sps:$4 sm:$0xff]  }
  0xb6   :  { %1432 = vmatpush1.bf16.msra.mxu1 %v2545_v7  ;;  %v2680_v7 = vld [vmem:[#allocation7 + $0xb0] ss:$8 sps:$4 sm:$0xff]  }
  0xb7   :  { %1389 = vmatpush1.bf16.msra.mxu0 %v2542_v6  ;;  %1444 = vmatprep.subr.bf16.mxu1 %v2553_v8  ;;  %v2607_v6 = vld [vmem:[#allocation5 + $0x44c] ss:$16 sps:$4 sm:$0xff]  }
  0xb8   :  { %1938 = vmatprep.subr.bf16.mxu0 %v2649_v23  ;;  %v2685_v8 = vld [vmem:[#allocation7 + $0xc4] ss:$8 sps:$4 sm:$0xff]   ;;  %v2692_v23 = vld [vmem:[#allocation7 + $0xf0] ss:$8 sps:$4 sm:$0xff]  }
  0xb9   :  { %1434 = vmatmul.mubr.bf16.vlgmr.msra.gmra.mrb[4].mxu1 %v2919_v4  ;;  %v2571_v4 = vld [vmem:[#allocation5 + $0x2cc] ss:$16 sps:$4 sm:$0xff]  }
  0xba   :  { %1391 = vmatmul.mubr.bf16.vlgmr.msra.gmra.mrb[0].mxu0 %v2928_v9  ;;  %1445 = vmatpush1.bf16.msra.mxu1 %v2551_v10  ;;  %v2605_v10 = vld [vmem:[#allocation5 + $0x448] ss:$16 sps:$4 sm:$0xff]  }
  0xbb   :  { %1476 = vmatprep.mubr.bf16.mxu1 %v2916_v51  ;;  %1446 = vmatprep.subr.bf16.mxu1 %v2556_v11  ;;  %v2574_v51 = vld [vmem:[#allocation5 + $0x2ec] ss:$16 sps:$4 sm:$0xff]  }
  0xbc   :  { %1939 = vmatpush1.bf16.msra.mxu0 %v2647_v22  ;;  %v2610_v11 = vld [vmem:[#allocation5 + $0x46c] ss:$16 sps:$4 sm:$0xff]   ;;  %v2620_v22 = vld [vmem:[#allocation5 + $0x4e8] ss:$16 sps:$4 sm:$0xff]  }
  0xbd   :  { %1940 = vmatprep.subr.bf16.mxu0 %v2652_v24  ;;  %v2625_v24 = vld [vmem:[#allocation5 + $0x50c] ss:$16 sps:$4 sm:$0xff]  }
  0xbe   :  { %1447 = vmatpush1.bf16.msra.mxu1 %v2554_v12  ;;  %v2683_v12 = vld [vmem:[#allocation7 + $0xc0] ss:$8 sps:$4 sm:$0xff]  }
  0xbf   :  { %1448 = vmatprep.subr.bf16.mxu1 %v2559_v13  ;;  %v2688_v13 = vld [vmem:[#allocation7 + $0xd4] ss:$8 sps:$4 sm:$0xff]  }
  0xc0   :  { %1941 = vmatpush1.bf16.msra.mxu0 %v2650_v27  ;;  %v2697_v27 = vld [vmem:[#allocation7 + $0x104] ss:$8 sps:$4 sm:$0xff]  }
  0xc1   :  { %1942 = vmatprep.subr.bf16.mxu0 %v2655_v28  ;;  %v2626_v28 = vld [vmem:[#allocation5 + $0x528] ss:$16 sps:$4 sm:$0xff]  }
  0xc2   :  { %1449 = vmatpush1.bf16.msra.mxu1 %v2557_v14  ;;  %v2613_v14 = vld [vmem:[#allocation5 + $0x48c] ss:$16 sps:$4 sm:$0xff]  }
  0xc3   :  { %1450 = vmatprep.subr.bf16.mxu1 %v2562_v15  ;;  %v2611_v15 = vld [vmem:[#allocation5 + $0x488] ss:$16 sps:$4 sm:$0xff]  }
  0xc4   :  { %1943 = vmatpush1.bf16.msra.mxu0 %v2653_v31  ;;  %v2634_v31 = vld [vmem:[#allocation5 + $0x56c] ss:$16 sps:$4 sm:$0xff]  }
  0xc5   :  { %1944 = vmatprep.subr.bf16.mxu0 %v2658_v32  ;;  %v2632_v32 = vld [vmem:[#allocation5 + $0x568] ss:$16 sps:$4 sm:$0xff]  }
  0xc6   :  { %1451 = vmatpush1.bf16.msra.mxu1 %v2560_v16  ;;  %v2616_v16 = vld [vmem:[#allocation5 + $0x4ac] ss:$16 sps:$4 sm:$0xff]  }
  0xc7   :  { %1452 = vmatprep.subr.bf16.mxu1 %v2565_v17  ;;  %v2614_v17 = vld [vmem:[#allocation5 + $0x4a8] ss:$16 sps:$4 sm:$0xff]  }
  0xc8   :  { %1945 = vmatpush1.bf16.msra.mxu0 %v2656_v36  ;;  %v2640_v36 = vld [vmem:[#allocation5 + $0x5ac] ss:$16 sps:$4 sm:$0xff]  }
  0xc9   :  { %1946 = vmatprep.subr.bf16.mxu0 %v2661_v37  ;;  %v2638_v37 = vld [vmem:[#allocation5 + $0x5a8] ss:$16 sps:$4 sm:$0xff]  }
  0xca   :  { %1453 = vmatpush1.bf16.msra.mxu1 %v2563_v18  ;;  %v2619_v18 = vld [vmem:[#allocation5 + $0x4cc] ss:$16 sps:$4 sm:$0xff]  }
  0xcb   :  { %1454 = vmatprep.subr.bf16.mxu1 %v2568_v19  ;;  %v2691_v19 = vld [vmem:[#allocation7 + $0xe4] ss:$8 sps:$4 sm:$0xff]  }
  0xcc   :  { %1947 = vmatpush1.bf16.msra.mxu0 %v2659_v40  ;;  %v2646_v40 = vld [vmem:[#allocation5 + $0x5ec] ss:$16 sps:$4 sm:$0xff]  }
  0xcd   :  { %1948 = vmatprep.subr.bf16.mxu0 %v2664_v41  ;;  %v2644_v41 = vld [vmem:[#allocation5 + $0x5e8] ss:$16 sps:$4 sm:$0xff]  }
  0xce   :  { %1455 = vmatpush1.bf16.msra.mxu1 %v2566_v20  ;;  %v2617_v20 = vld [vmem:[#allocation5 + $0x4c8] ss:$16 sps:$4 sm:$0xff]  }
  0xcf   :  { %1456 = vmatprep.subr.bf16.mxu1 %v2571_v4  ;;  %v2689_v4 = vld [vmem:[#allocation7 + $0xe0] ss:$8 sps:$4 sm:$0xff]  }
  0xd0   :  { %1949 = vmatpush1.bf16.msra.mxu0 %v2662_v44 }
  0xd1   :  { %1950 = vmatprep.subr.bf16.mxu0 %v2667_v45 }
  0xd2   :  { %1457 = vmatpush1.bf16.msra.mxu1 %v2569_v21  ;;  %v2622_v21 = vld [vmem:[#allocation5 + $0x4ec] ss:$16 sps:$4 sm:$0xff]  }
  0xd3   :  { %1458 = vmatprep.subr.bf16.mxu1 %v2574_v51  ;;  %v2694_v51 = vld [vmem:[#allocation7 + $0xf4] ss:$8 sps:$4 sm:$0xff]  }
  0xd4   :  { %1951 = vmatpush1.bf16.msra.mxu0 %v2665_v48 }
  0xd5   :  { %1952 = vmatprep.subr.bf16.mxu0 %v2670_v49  ;;  %v2942_v49 = vld [vmem:[%s2979_s2] sm:$0xf] }
  0xd6   :  { %1459 = vmatpush1.bf16.msra.mxu1 %v2572_v25  ;;  %v2623_v25 = vld [vmem:[#allocation5 + $0x508] ss:$16 sps:$4 sm:$0xff]  }
  0xd7   :  { %1460 = vmatprep.subr.bf16.mxu1 %v2577_v26  ;;  %v2628_v26 = vld [vmem:[#allocation5 + $0x52c] ss:$16 sps:$4 sm:$0xff]  }
  0xd8   :  { %1953 = vmatpush1.bf16.msra.mxu0 %v2668_v53 }
  0xd9   :  { %1954 = vmatprep.subr.bf16.mxu0 %v2673_v54 }
  0xda   :  { %1461 = vmatpush1.bf16.msra.mxu1 %v2575_v29  ;;  %v2631_v29 = vld [vmem:[#allocation5 + $0x54c] ss:$16 sps:$4 sm:$0xff]  }
  0xdb   :  { %1462 = vmatprep.subr.bf16.mxu1 %v2580_v30  ;;  %v2629_v30 = vld [vmem:[#allocation5 + $0x548] ss:$16 sps:$4 sm:$0xff]  }
  0xdc   :  { %1955 = vmatpush1.bf16.msra.mxu0 %v2671_v57 }
  0xdd   :  { %1956 = vmatprep.subr.bf16.mxu0 %v2676_v58 }
  0xde   :  { %1463 = vmatpush1.bf16.msra.mxu1 %v2578_v33  ;;  %v2637_v33 = vld [vmem:[#allocation5 + $0x58c] ss:$16 sps:$4 sm:$0xff]  }
  0xdf   :  { %1464 = vmatprep.subr.bf16.mxu1 %v2583_v35  ;;  %v2635_v35 = vld [vmem:[#allocation5 + $0x588] ss:$16 sps:$4 sm:$0xff]  }
  0xe0   :  { %1957 = vmatpush1.bf16.msra.mxu0 %v2674_v61 }
  0xe1   :  { %1958 = vmatprep.subr.bf16.mxu0 %v2679_v62 }
  0xe2   :  { %1465 = vmatpush1.bf16.msra.mxu1 %v2581_v38  ;;  %v2643_v38 = vld [vmem:[#allocation5 + $0x5cc] ss:$16 sps:$4 sm:$0xff]  }
  0xe3   :  { %1466 = vmatprep.subr.bf16.mxu1 %v2586_v39  ;;  %v2641_v39 = vld [vmem:[#allocation5 + $0x5c8] ss:$16 sps:$4 sm:$0xff]  }
  0xe4   :  { %1959 = vmatpush1.bf16.msra.mxu0 %v2677_v1 }
  0xe5   :  { %1960 = vmatprep.subr.bf16.mxu0 %v2682_v2 }
  0xe6   :  { %1467 = vmatpush1.bf16.msra.mxu1 %v2584_v42 }
  0xe7   :  { %1468 = vmatprep.subr.bf16.mxu1 %v2589_v43 }
  0xe8   :  { %1961 = vmatpush1.bf16.msra.mxu0 %v2680_v7 }
  0xe9   :  { %1962 = vmatprep.subr.bf16.mxu0 %v2685_v8 }
  0xea   :  { %1469 = vmatpush1.bf16.msra.mxu1 %v2587_v46  ;;  %v262_v46 = vlaneseq }
  0xeb   :  { %1470 = vmatprep.subr.bf16.mxu1 %v2592_v47 }
  0xec   :  { %1963 = vmatpush1.bf16.msra.mxu0 %v2683_v12  ;;  %v2936_v47 = vshrl.u32 %v262_v46, 7  ;;  %v2698_v12 = vld [vmem:[#allocation7 + $0x110] ss:$8 sps:$4 sm:$0xff]  }
  0xed   :  { %1964 = vmatprep.subr.bf16.mxu0 %v2688_v13  ;;  %v2703_v13 = vld [vmem:[#allocation7 + $0x124] ss:$8 sps:$4 sm:$0xff]  }
  0xee   :  { %1471 = vmatpush1.bf16.msra.mxu1 %v2590_v50  ;;  %v264_v48 = vsub.s32 0, %v2936_v47  ;;  %v268_v50 = vsub.s32 1, %v2936_v47 }
  0xef   :  { %1472 = vmatprep.subr.bf16.mxu1 %v2595_v52 }
  0xf0   :  { %v269_v52 = vrot.slane %v2942_v49, %v268_v50 }
  0xf2   :  { %1473 = vmatpush1.bf16.msra.mxu1 %v2593_v55 }
  0xf3   :  { %1474 = vmatprep.subr.bf16.mxu1 %v2598_v56 }
  0xf6   :  { %1475 = vmatpush1.bf16.msra.mxu1 %v2596_v59 }
  0xf7   :  { %1487 = vmatprep.subr.bf16.mxu1 %v2601_v60 }
  0xf9   :  { %1477 = vmatmul.mubr.bf16.vlgmr.msra.gmra.mrb[4].mxu1 %v2921_v5  ;;  %v2608_v5 = vld [vmem:[#allocation5 + $0x468] ss:$16 sps:$4 sm:$0xff]  }
  0xfa   :  { %1488 = vmatpush1.bf16.msra.mxu1 %v2599_v63  ;;  %1519 = vmatprep.mubr.bf16.mxu1 %v2925_v34  ;;  %v2686_v34 = vld [vmem:[#allocation7 + $0xd0] ss:$8 sps:$4 sm:$0xff]  }
  0xfb   :  { %1489 = vmatprep.subr.bf16.mxu1 %v2604_v0  ;;  %1965 = vmatpush1.bf16.msra.mxu0 %v2686_v34  ;;  %v2704_v34 = vld [vmem:[#allocation7 + $0x130] ss:$8 sps:$4 sm:$0xff]  }
  0xfc   :  { %1966 = vmatprep.subr.bf16.mxu0 %v2691_v19  ;;  %v2715_v19 = vld [vmem:[#allocation7 + $0x164] ss:$8 sps:$4 sm:$0xff]  }
  0xfe   :  { %1490 = vmatpush1.bf16.msra.mxu1 %v2602_v3 }
  0xff   :  { %1491 = vmatprep.subr.bf16.mxu1 %v2607_v6  ;;  %1967 = vmatpush1.bf16.msra.mxu0 %v2689_v4  ;;  %v2718_v4 = vld [vmem:[#allocation7 + $0x174] ss:$8 sps:$4 sm:$0xff]  }
 0x100   :  { %1968 = vmatprep.subr.bf16.mxu0 %v2694_v51  ;;  %v2721_v51 = vld [vmem:[#allocation7 + $0x184] ss:$8 sps:$4 sm:$0xff]  }
 0x102   :  { %1492 = vmatpush1.bf16.msra.mxu1 %v2605_v10  ;;  %v2695_v10 = vld [vmem:[#allocation7 + $0x100] ss:$8 sps:$4 sm:$0xff]  }
 0x103   :  { %1493 = vmatprep.subr.bf16.mxu1 %v2610_v11  ;;  %1969 = vmatpush1.bf16.msra.mxu0 %v2692_v23  ;;  %v2700_v11 = vld [vmem:[#allocation7 + $0x114] ss:$8 sps:$4 sm:$0xff]  }
 0x104   :  { %1981 = vmatprep.subr.bf16.mxu0 %v2697_v27  ;;  %v2724_v23 = vld [vmem:[#allocation7 + $0x194] ss:$8 sps:$4 sm:$0xff]  }
 0x105   :  { %v2730_v27 = vld [vmem:[#allocation7 + $0x1b4] ss:$8 sps:$4 sm:$0xff]  }
 0x106   :  { %1494 = vmatpush1.bf16.msra.mxu1 %v2608_v5  ;;  %v2701_v5 = vld [vmem:[#allocation7 + $0x120] ss:$8 sps:$4 sm:$0xff]  }
 0x107   :  { %1495 = vmatprep.subr.bf16.mxu1 %v2613_v14  ;;  %v2706_v14 = vld [vmem:[#allocation7 + $0x134] ss:$8 sps:$4 sm:$0xff]  }
 0x10a   :  { %1496 = vmatpush1.bf16.msra.mxu1 %v2611_v15  ;;  %v2709_v15 = vld [vmem:[#allocation7 + $0x144] ss:$8 sps:$4 sm:$0xff]  }
 0x10b   :  { %1497 = vmatprep.subr.bf16.mxu1 %v2616_v16  ;;  %v2707_v16 = vld [vmem:[#allocation7 + $0x140] ss:$8 sps:$4 sm:$0xff]  }
 0x10e   :  { %1498 = vmatpush1.bf16.msra.mxu1 %v2614_v17  ;;  %v2712_v17 = vld [vmem:[#allocation7 + $0x154] ss:$8 sps:$4 sm:$0xff]  }
 0x10f   :  { %1499 = vmatprep.subr.bf16.mxu1 %v2619_v18  ;;  %v2710_v18 = vld [vmem:[#allocation7 + $0x150] ss:$8 sps:$4 sm:$0xff]  }
 0x112   :  { %1500 = vmatpush1.bf16.msra.mxu1 %v2617_v20  ;;  %v2713_v20 = vld [vmem:[#allocation7 + $0x160] ss:$8 sps:$4 sm:$0xff]  }
 0x113   :  { %1501 = vmatprep.subr.bf16.mxu1 %v2622_v21  ;;  %v2716_v21 = vld [vmem:[#allocation7 + $0x170] ss:$8 sps:$4 sm:$0xff]  }
 0x116   :  { %1502 = vmatpush1.bf16.msra.mxu1 %v2620_v22  ;;  %v2719_v22 = vld [vmem:[#allocation7 + $0x180] ss:$8 sps:$4 sm:$0xff]  }
 0x117   :  { %1503 = vmatprep.subr.bf16.mxu1 %v2625_v24  ;;  %v2722_v24 = vld [vmem:[#allocation7 + $0x190] ss:$8 sps:$4 sm:$0xff]  }
 0x11a   :  { %1504 = vmatpush1.bf16.msra.mxu1 %v2623_v25  ;;  %v2727_v25 = vld [vmem:[#allocation7 + $0x1a4] ss:$8 sps:$4 sm:$0xff]  }
 0x11b   :  { %1505 = vmatprep.subr.bf16.mxu1 %v2628_v26  ;;  %v2725_v26 = vld [vmem:[#allocation7 + $0x1a0] ss:$8 sps:$4 sm:$0xff]  }
 0x11e   :  { %1506 = vmatpush1.bf16.msra.mxu1 %v2626_v28  ;;  %v2728_v28 = vld [vmem:[#allocation7 + $0x1b0] ss:$8 sps:$4 sm:$0xff]  }
 0x11f   :  { %1507 = vmatprep.subr.bf16.mxu1 %v2631_v29  ;;  %v2733_v29 = vld [vmem:[#allocation7 + $0x1c4] ss:$8 sps:$4 sm:$0xff]  }
 0x122   :  { %1508 = vmatpush1.bf16.msra.mxu1 %v2629_v30  ;;  %v2731_v30 = vld [vmem:[#allocation7 + $0x1c0] ss:$8 sps:$4 sm:$0xff]  }
 0x123   :  { %1509 = vmatprep.subr.bf16.mxu1 %v2634_v31  ;;  %v2736_v31 = vld [vmem:[#allocation7 + $0x1d4] ss:$8 sps:$4 sm:$0xff]  }
 0x126   :  { %1510 = vmatpush1.bf16.msra.mxu1 %v2632_v32  ;;  %v2734_v32 = vld [vmem:[#allocation7 + $0x1d0] ss:$8 sps:$4 sm:$0xff]  }
 0x127   :  { %1511 = vmatprep.subr.bf16.mxu1 %v2637_v33  ;;  %v2739_v33 = vld [vmem:[#allocation7 + $0x1e4] ss:$8 sps:$4 sm:$0xff]  }
 0x12a   :  { %1512 = vmatpush1.bf16.msra.mxu1 %v2635_v35  ;;  %v2737_v35 = vld [vmem:[#allocation7 + $0x1e0] ss:$8 sps:$4 sm:$0xff]  }
 0x12b   :  { %1513 = vmatprep.subr.bf16.mxu1 %v2640_v36  ;;  %v2742_v36 = vld [vmem:[#allocation7 + $0x1f4] ss:$8 sps:$4 sm:$0xff]  }
 0x12e   :  { %1514 = vmatpush1.bf16.msra.mxu1 %v2638_v37  ;;  %v2740_v37 = vld [vmem:[#allocation7 + $0x1f0] ss:$8 sps:$4 sm:$0xff]  }
 0x12f   :  { %1515 = vmatprep.subr.bf16.mxu1 %v2643_v38  ;;  %v272_v38 = vsub.s32 2, %v2936_v47 }
 0x132   :  { %1516 = vmatpush1.bf16.msra.mxu1 %v2641_v39  ;;  %v276_v39 = vsub.s32 3, %v2936_v47 }
 0x133   :  { %1517 = vmatprep.subr.bf16.mxu1 %v2646_v40  ;;  %v273_v40 = vrot.slane %v2942_v49, %v272_v38 }
 0x136   :  { %1518 = vmatpush1.bf16.msra.mxu1 %v2644_v41  ;;  %v277_v41 = vrot.slane %v2942_v49, %v276_v39 }
 0x139   :  { %1520 = vmatmul.mubr.bf16.vlgmr.msra.gmra.mrb[4].mxu1 %v2928_v9  ;;  %v265_v9 = vrot.slane %v2942_v49, %v264_v48  ;;  %v1606_v49 = vld [vmem:[%s2981_s4] sm:$0x3]  ;;  %s2809_s4 = scalar_lea.vmem %s2034_s13, 512 }
 0x13a   :  { %p2810_p10 = scmp.ne.s32.totalorder %s2034_s13, %s2809_s4  ;;  %p2815_p12 = scmp.lt.s32.totalorder %s2809_s4, %s2809_s4 }
 0x13c   :  { %p2816_p13 = por %p2815_p12, %p2814_p11 }
 0x13e   :  { %p2817_p0 = pnand %p2816_p13, %p2810_p10 }
 0x14c   :  { %v1306_v42 = vpop.f32.mrb[0].mxu1 }
 0x14d   :  { %v1308_v43 = vpop.f32.mrb[1].mxu1  ;;  %v1307_v53 = vadd.f32 %v1306_v42, %v265_v9 }
 0x14e   :  { %v1310_v44 = vpop.f32.mrb[2].mxu1  ;;  %v1309_v54 = vadd.f32 %v1308_v43, %v269_v52 }
 0x14f   :  { %v1312_v45 = vpop.f32.mrb[3].mxu1  ;;  %v1311_v56 = vadd.f32 %v1310_v44, %v265_v9 }
 0x150   :  { %v1313_v59 = vadd.f32 %v1312_v45, %v269_v52 }
 0x18d   :  { %v1392_v55 = vpop.f32.mrb[0].mxu0 }
 0x18e   :  { %v2309_v57 = vadd.f32 %v1392_v55, %v1307_v53  ;;  %v1394_v58 = vpop.f32.mrb[1].mxu0 }
 0x18f   :  { %v2311_v60 = vadd.f32 %v1394_v58, %v1309_v54  ;;  %v1396_v61 = vpop.f32.mrb[2].mxu0 }
 0x190   :  { %v2313_v62 = vadd.f32 %v1396_v61, %v1311_v56  ;;  %v1398_v63 = vpop.f32.mrb[3].mxu0  ;;  %v1530_v1 = vmax.f32 %v2309_v57, 0.0  ;;  %v1615_v61 = vrot.slane %v1606_v49, %v268_v50 }
 0x191   :  { %v2315_v0 = vadd.f32 %v1398_v63, %v1313_v59  ;;  %v1531_v3 = vmax.f32 %v2311_v60, 0.0  ;;  %v1611_v60 = vrot.slane %v1606_v49, %v264_v48 }
 0x192   :  { %v1534_v2 = vmax.f32 %v2313_v62, 0.0 }
 0x193   :  { %v1535_v6 = vmax.f32 %v2315_v0, 0.0 }
 0x194   :  { %v1538_v7 = vpack.c.bf16 %v1534_v2, %v1530_v1 }
 0x195   :  { %v1539_v8 = vpack.c.bf16 %v1535_v6, %v1531_v3 }
 0x197   :  { %1970 = vmatprep.mubr.bf16.mxu0 %v1539_v8 }
 0x198   :  { %1971 = vmatmul.mubr.bf16.vlgmr.msra.gmra.mrb[4].mxu0 %v1538_v7 }
 0x199   :  { %1982 = vmatpush1.bf16.msra.mxu0 %v2695_v10 }
 0x19a   :  { %1983 = vmatprep.subr.bf16.mxu0 %v2700_v11 }
 0x19d   :  { %1984 = vmatpush1.bf16.msra.mxu0 %v2698_v12 }
 0x19e   :  { %1985 = vmatprep.subr.bf16.mxu0 %v2703_v13 }
 0x1a1   :  { %1986 = vmatpush1.bf16.msra.mxu0 %v2701_v5 }
 0x1a2   :  { %1987 = vmatprep.subr.bf16.mxu0 %v2706_v14 }
 0x1a5   :  { %1988 = vmatpush1.bf16.msra.mxu0 %v2704_v34 }
 0x1a6   :  { %1989 = vmatprep.subr.bf16.mxu0 %v2709_v15 }
 0x1a9   :  { %1990 = vmatpush1.bf16.msra.mxu0 %v2707_v16 }
 0x1aa   :  { %1991 = vmatprep.subr.bf16.mxu0 %v2712_v17 }
 0x1ad   :  { %1992 = vmatpush1.bf16.msra.mxu0 %v2710_v18 }
 0x1ae   :  { %1993 = vmatprep.subr.bf16.mxu0 %v2715_v19 }
 0x1b1   :  { %1994 = vmatpush1.bf16.msra.mxu0 %v2713_v20 }
 0x1b2   :  { %1995 = vmatprep.subr.bf16.mxu0 %v2718_v4 }
 0x1b5   :  { %1996 = vmatpush1.bf16.msra.mxu0 %v2716_v21 }
 0x1b6   :  { %1997 = vmatprep.subr.bf16.mxu0 %v2721_v51 }
 0x1b9   :  { %1998 = vmatpush1.bf16.msra.mxu0 %v2719_v22 }
 0x1ba   :  { %1999 = vmatprep.subr.bf16.mxu0 %v2724_v23 }
 0x1bd   :  { %2000 = vmatpush1.bf16.msra.mxu0 %v2722_v24 }
 0x1be   :  { %2001 = vmatprep.subr.bf16.mxu0 %v2727_v25 }
 0x1c1   :  { %2002 = vmatpush1.bf16.msra.mxu0 %v2725_v26 }
 0x1c2   :  { %2003 = vmatprep.subr.bf16.mxu0 %v2730_v27 }
 0x1c5   :  { %2004 = vmatpush1.bf16.msra.mxu0 %v2728_v28 }
 0x1c6   :  { %2005 = vmatprep.subr.bf16.mxu0 %v2733_v29 }
 0x1c9   :  { %2006 = vmatpush1.bf16.msra.mxu0 %v2731_v30 }
 0x1ca   :  { %2007 = vmatprep.subr.bf16.mxu0 %v2736_v31 }
 0x1cd   :  { %2008 = vmatpush1.bf16.msra.mxu0 %v2734_v32 }
 0x1ce   :  { %2009 = vmatprep.subr.bf16.mxu0 %v2739_v33 }
 0x1d1   :  { %2010 = vmatpush1.bf16.msra.mxu0 %v2737_v35 }
 0x1d2   :  { %2011 = vmatprep.subr.bf16.mxu0 %v2742_v36 }
 0x1d5   :  { %2012 = vmatpush1.bf16.msra.mxu0 %v2740_v37 }
 0x20c   :  { %v1521_v42 = vpop.f32.mrb[4].mxu1 }
 0x20d   :  { %v2316_v43 = vadd.f32 %v1521_v42, %v273_v40  ;;  %v1523_v44 = vpop.f32.mrb[5].mxu1 }
 0x20e   :  { %v2317_v45 = vadd.f32 %v1523_v44, %v277_v41  ;;  %v1525_v46 = vpop.f32.mrb[6].mxu1 }
 0x20f   :  { %v2318_v9 = vadd.f32 %v1525_v46, %v273_v40  ;;  %v1527_v52 = vpop.f32.mrb[7].mxu1  ;;  %v1532_v54 = vmax.f32 %v2316_v43, 0.0 }
 0x210   :  { %v2319_v53 = vadd.f32 %v1527_v52, %v277_v41  ;;  %v1533_v56 = vmax.f32 %v2317_v45, 0.0 }
 0x211   :  { %v1536_v55 = vmax.f32 %v2318_v9, 0.0 }
 0x212   :  { %v1537_v57 = vmax.f32 %v2319_v53, 0.0 }
 0x213   :  { %v1540_v58 = vpack.c.bf16 %v1536_v55, %v1532_v54 }
 0x214   :  { %v1541_v59 = vpack.c.bf16 %v1537_v57, %v1533_v56 }
 0x216   :  { %2013 = vmatprep.mubr.bf16.mxu0 %v1541_v59 }
 0x217   :  { %2014 = vmatmul.mubr.bf16.vlgmr.msra.gmra.mrb[4].mxu0 %v1540_v58 }
 0x2ea   :  { %v2015_v62 = vpop.f32.mrb[4].mxu0 }
 0x2eb   :  { %v2320_v63 = vadd.f32 %v2015_v62, %v1611_v60  ;;  %v2017_v0 = vpop.f32.mrb[5].mxu0 }
 0x2ec   :  { %v2321_v1 = vadd.f32 %v2017_v0, %v1615_v61  ;;  %v2019_v2 = vpop.f32.mrb[6].mxu0 }
 0x2ed   :  { %2024 = vst [vmem:[#allocation8] sm:$0xff] %v2320_v63  ;;  %v2322_v3 = vadd.f32 %v2019_v2, %v1611_v60  ;;  %v2021_v6 = vpop.f32.mrb[7].mxu0 }
 0x2ee   :  { %2025 = vst [vmem:[#allocation8 + $0x8] sm:$0xff] %v2321_v1  ;;  %v2323_v7 = vadd.f32 %v2021_v6, %v1615_v61 }
 0x2ef   :  { %2026 = vst [vmem:[#allocation8 + $0x10] sm:$0xff] %v2322_v3 }
 0x2f0   :  { %2027 = vst [vmem:[#allocation8 + $0x18] sm:$0xff] %v2323_v7 }
 0x2f1   :  { %2820 = shalt.err (!%p2817_p0)
}
 0x2f2   :  { %s2821_s16 = scalar_lea.hbm %s2982_s5, 512 }
 0x2f3   :  { %p2822_p1 = scmp.ne.s32.totalorder %s2982_s5, %s2821_s16  ;;  %p2825_p2 = scmp.lt.u32.totalorder %s2821_s16, %s2982_s5 }
 0x2f5   :  { %p2827_p3 = pnand %p2825_p2, %p2822_p1 }
 0x2f7   :  { %2830 = shalt.err (!%p2827_p3)
}
 0x2f8   :  { %2039 = dma.vmem_to_hbm [thread:$0]  %s2034_s13, 512, %s2982_s5, [#allocation4], %s2838_s28, %s2838_s28, %s2839_s29  }
 0x2f9   :  { %2835 = dma.done.wait [#allocation4], 512  }
 0x2fa   :  { %2836 = vsyncadd [#allocation4], 4294966784 }
 0x2fb   :  { %2043 = vsyncpa [#allocation3], 1 }
 0x2fc   :  { %2044 = vsyncpa [#allocation6], 1 }
 0x2fd   :  { %2045 = vsyncpa [#allocation4], 1 }

</bundles_post_ra>
